<compile_context>
chip_gen: v7x
topology: tpu7x:2x2x1
jax: 0.10.0
libtpu: 0.0.40
codegen_flags: <defaults>
</compile_context>

<pallas_src>
import functools

import jax
import jax.numpy as jnp
from jax import lax
from jax.experimental import pallas as pl
from jax.experimental.pallas import tpu as pltpu

T1 = 0.05
INV_T1 = 1.0 / T1
EPS = 1e-05            # eps inside the -log(), as in the PyTorch module
NORM_EPS_SQ = 1e-24    # (F.normalize eps = 1e-12) ** 2


def _normalize_kernel(q_ref, k_ref, qn_ref, kn_ref):
    # F.normalize(x, dim=1) == x * rsqrt(max(sum(x^2), 1e-24)); rsqrt runs on
    # the EUP.  The 1/T1 logit scale is folded into the q-side normalization
    # so the (t, t) tiles in the loss kernel never see a per-element divide.
    # This pre-pass runs once per row block; the loss kernel reuses the
    # normalized values for the whole (nb, nb) grid.
    # TODO(synk): emit bf16 qn/kn here (matmul with f32 accumulation) once
    # validated against the 5e-4 tolerance -- halves k-stream bytes and uses
    # the fast MXU path on v5e/v6e/v7x.
    q = q_ref[...].astype(jnp.float32)
    k = k_ref[...].astype(jnp.float32)
    inv_q = lax.rsqrt(jnp.maximum(jnp.sum(q * q, axis=1, keepdims=True),
                                  NORM_EPS_SQ)) * INV_T1
    inv_k = lax.rsqrt(jnp.maximum(jnp.sum(k * k, axis=1, keepdims=True),
                                  NORM_EPS_SQ))
    qn_ref[...] = q * inv_q
    kn_ref[...] = k * inv_k


def _loss_kernel(qn_ref, kn_ref, out_ref,
                 rows_sc, cols_sc, dcol_sc, drow_sc, loss_sc,
                 *, inv_batch):
    i = pl.program_id(0)           # q row-block (outer)
    j = pl.program_id(1)           # k row-block (inner / reduction)
    nbi = pl.num_programs(0)
    nbj = pl.num_programs(1)

    qn = qn_ref[...]               # (t, D), pre-normalized, carries 1/T1
    kn = kn_ref[...]               # (t, D), pre-normalized

    # S[a, b] = <q[a], k[b]> / (|q[a]| |k[b]| T1) -- contract the lane (D)
    # axis of both operands directly; no explicit kn.T materialization.
    S = lax.dot_general(qn, kn, (((1,), (1,)), ((), ())),
                        preferred_element_type=jnp.float32)   # (t, t)
    # exp without max-subtraction is safe ONLY because rows are L2-normalized:
    # |S| <= 1/T1 = 20, exp(S) <= ~5e8, and row/column sums of <= B * 5e8 stay
    # well inside f32 range.  Revisit if T1 shrinks or normalization changes.
    # TODO(synk): slab the S/E computation over 128-wide kn chunks
    # (fori_loop, unroll=True) to overlap MXU pushes with the EUP exp drain
    # in the small-D (EUP-bound) regime.
    E = jnp.exp(S)

    rpart = jnp.sum(E, axis=1, keepdims=True)   # (t, 1) per-q-row partial sum
    cpart = jnp.sum(E, axis=0, keepdims=True)   # (1, t) per-k-row partial sum

    @pl.when(jnp.logical_and(i == 0, j == 0))
    def _():
        loss_sc[...] = jnp.zeros_like(loss_sc)

    @pl.when(j == 0)
    def _():
        rows_sc[...] = rpart

    @pl.when(j != 0)
    def _():
        rows_sc[...] = rows_sc[...] + rpart

    @pl.when(i == 0)
    def _():
        cols_sc[j] = cpart

    @pl.when(i != 0)
    def _():
        cols_sc[j] = cols_sc[j] + cpart

    # The global diagonal only lives in the i == j tiles.  Sublane-major copy
    # (qk / row loss) from a rowwise qn.kn dot; lane-major copy (kq / column
    # loss) from a masked sublane reduce of E.  The masked reduce touches only
    # 1/nb of the grid steps and lowers unconditionally on all targets.
    # TODO(synk): replace the iota mask with a (t,1)->(1,t) relayout of dcol
    # once Mosaic's small-minor-dim transpose is verified on v5e/v6e/v7x.
    @pl.when(i == j)
    def _():
        dcol_sc[...] = jnp.exp(jnp.sum(qn * kn, axis=1, keepdims=True))  # (t, 1)
        ri = lax.broadcasted_iota(jnp.int32, E.shape, 0)
        ci = lax.broadcasted_iota(jnp.int32, E.shape, 1)
        drow_sc[j] = jnp.sum(jnp.where(ri == ci, E, 0.0),
                             axis=0, keepdims=True)                      # (1, t)

    # Row sums (and the diagonal) for row-block i are complete at the end of
    # the inner j sweep: fold the qk half of the loss into the running scalar
    # accumulator right away, instead of retaining nb lane-padded (t, 1)
    # blocks until the final step.
    @pl.when(j == nbj - 1)
    def _():
        loss_qk_i = jnp.sum(-jnp.log(dcol_sc[...] / rows_sc[...] + EPS))
        loss_sc[...] = loss_sc[...] + loss_qk_i

    # Column sums are only complete after the full i sweep: fold the kq half
    # and write the scalar output once, at the last grid step.
    @pl.when(jnp.logical_and(i == nbi - 1, j == nbj - 1))
    def _():
        loss_kq = jnp.sum(-jnp.log(drow_sc[...] / cols_sc[...] + EPS))
        out_ref[...] = (loss_sc[...] + loss_kq) * inv_batch


def _vmem_working_set_bytes(B, t, D):
    nb = B // t
    blocks = 2 * 2 * t * D * 4             # double-buffered qn / kn input blocks
    work = 2 * t * t * 4                   # S / E tile + elementwise temporaries
    scratch = (2 * t * 128 * 4             # rows_sc, dcol_sc (lane-padded 1->128)
               + 2 * nb * 8 * t * 4        # cols_sc, drow_sc (sublane-padded 1->8)
               + 8 * 128 * 4)              # loss_sc
    return blocks + work + scratch


# Keep the per-step working set comfortably inside v7x's 64 MiB physical /
# 32 MiB scoped VMEM; v5e/v6e (128 MiB) are looser.
_VMEM_BUDGET = 24 * 1024 * 1024
_VMEM_LIMIT = 32 * 1024 * 1024


def _pick_tile(B, D):
    # Largest (8,128)-friendly tile that divides B and keeps the FULL
    # per-step working set (double-buffered q/k blocks + (t,t) S/E tile +
    # scratch) inside the VMEM budget on every TPU generation.
    for t in (512, 256, 128, 64, 32, 16, 8):
        if B % t == 0 and _vmem_working_set_bytes(B, t, D) <= _VMEM_BUDGET:
            return t
    if _vmem_working_set_bytes(B, B, D) <= _VMEM_BUDGET:
        return B     # tiny / odd batch: single block (block == full array is legal)
    raise ValueError(
        f"no tile size fits the VMEM budget for B={B}, D={D}; pad the batch "
        "to a multiple of 128 or reduce the feature dimension")


def self_contrastive_loss(q, k, *, tile=None):
    B, D = q.shape
    assert k.shape == (B, D)
    t = _pick_tile(B, D) if tile is None else tile
    assert B % t == 0, "batch must be divisible by the tile size"
    nb = B // t

    # Pre-pass: normalize q (with 1/T1 folded in) and k exactly once.
    qn, kn = pl.pallas_call(
        _normalize_kernel,
        grid=(nb,),
        out_shape=(jax.ShapeDtypeStruct((B, D), jnp.float32),
                   jax.ShapeDtypeStruct((B, D), jnp.float32)),
        in_specs=[
            pl.BlockSpec((t, D), lambda i: (i, 0)),
            pl.BlockSpec((t, D), lambda i: (i, 0)),
        ],
        out_specs=(
            pl.BlockSpec((t, D), lambda i: (i, 0)),
            pl.BlockSpec((t, D), lambda i: (i, 0)),
        ),
        compiler_params=pltpu.CompilerParams(
            dimension_semantics=("parallel",),
            vmem_limit_bytes=_VMEM_LIMIT,
        ),
    )(q, k)

    kernel = functools.partial(_loss_kernel, inv_batch=1.0 / B)
    out = pl.pallas_call(
        kernel,
        grid=(nb, nb),
        out_shape=jax.ShapeDtypeStruct((1, 1), jnp.float32),
        in_specs=[
            pl.BlockSpec((t, D), lambda i, j: (i, 0)),   # qn: resident over j
            pl.BlockSpec((t, D), lambda i, j: (j, 0)),   # kn: streamed over j
        ],
        # (1, 1) f32 output block, written once at the last grid step; the
        # once-per-call lane-sparse store is negligible.
        out_specs=pl.BlockSpec((1, 1), lambda i, j: (0, 0)),
        scratch_shapes=[
            pltpu.VMEM((t, 1), jnp.float32),       # row sums, current i block
            pltpu.VMEM((nb, 1, t), jnp.float32),   # col sums (lane-major)
            pltpu.VMEM((t, 1), jnp.float32),       # diag, current i block
            pltpu.VMEM((nb, 1, t), jnp.float32),   # diag (lane-major)
            pltpu.VMEM((1, 1), jnp.float32),       # running qk-loss accumulator
        ],
        compiler_params=pltpu.CompilerParams(
            # Both grid axes carry cross-iteration scratch state (cols/diag/
            # loss accumulate across i), so both must stay "arbitrary".
            # TODO(synk): v7x megacore -- give each core its own column-sum /
            # loss partials (or run loss_kq = loss_qk(k, q) as a second pass)
            # plus a cross-core combine, then mark the i axis "parallel".
            dimension_semantics=("arbitrary", "arbitrary"),
            # Working set is budgeted to <= 24 MiB; request 32 MiB (not the
            # full 64 MiB of a v7x TensorCore).
            vmem_limit_bytes=_VMEM_LIMIT,
        ),
    )(qn, kn)
    return out[0, 0]


def _reference_loss(q, k):
    # Pure-JAX reference mirroring the PyTorch module.
    qn = q / jnp.maximum(jnp.linalg.norm(q, axis=1, keepdims=True), 1e-12)
    kn = k / jnp.maximum(jnp.linalg.norm(k, axis=1, keepdims=True), 1e-12)
    B = q.shape[0]
    reps = jnp.concatenate([qn, kn], axis=0)
    sim = reps @ reps.T
    sim_qk = jnp.diagonal(sim, offset=B)
    sim_kq = jnp.diagonal(sim, offset=-B)
    neg_mask = 1.0 - jnp.eye(B, dtype=jnp.float32)
    nom_qk = jnp.exp(sim_qk / T1)
    den_qk = nom_qk + jnp.sum(neg_mask * jnp.exp(sim[:B, B:] / T1), axis=1)
    nom_kq = jnp.exp(sim_kq / T1)
    den_kq = nom_kq + jnp.sum(neg_mask * jnp.exp(sim[B:, :B] / T1), axis=1)
    loss_qk = jnp.sum(-jnp.log(nom_qk / den_qk + EPS)) / B
    loss_kq = jnp.sum(-jnp.log(nom_kq / den_kq + EPS)) / B
    return loss_qk + loss_kq


if __name__ == "__main__":
    key = jax.random.PRNGKey(0)
    kq1, kk1, kq2, kk2 = jax.random.split(key, 4)

    # Small shape matching the module's (batch, hidden) convention.
    B1, D1 = 8, 32
    q1 = jax.random.normal(kq1, (B1, D1), dtype=jnp.float32)
    k1 = jax.random.normal(kk1, (B1, D1), dtype=jnp.float32)
    out1 = jax.block_until_ready(self_contrastive_loss(q1, k1))
    ref1 = jax.block_until_ready(_reference_loss(q1, k1))
    assert jnp.allclose(out1, ref1, rtol=1e-4, atol=1e-4), (out1, ref1)

    # Multi-tile path: 128-row tiles -> (3, 3) grid, exercises the row/col/
    # diag accumulation and the running-scalar qk fold across grid steps.
    B2, D2 = 384, 64
    q2 = jax.random.normal(kq2, (B2, D2), dtype=jnp.float32)
    k2 = jax.random.normal(kk2, (B2, D2), dtype=jnp.float32)
    out2 = jax.block_until_ready(self_contrastive_loss(q2, k2, tile=128))
    ref2 = jax.block_until_ready(_reference_loss(q2, k2))
    assert jnp.allclose(out2, ref2, rtol=5e-4, atol=5e-4), (out2, ref2)

    print("KERNEL_OK")
</pallas_src>

<mosaic_0001>
module attributes {stable_mosaic.version = 11 : i64} {
  func.func @_normalize_kernel(%arg0: i32, %arg1: memref<8x32xf32, #tpu.memory_space<vmem>>, %arg2: memref<8x32xf32, #tpu.memory_space<vmem>>, %arg3: memref<8x32xf32, #tpu.memory_space<vmem>>, %arg4: memref<8x32xf32, #tpu.memory_space<vmem>>) attributes {dimension_semantics = [#tpu.dimension_semantics<parallel>], iteration_bounds = array<i64: 1>, scalar_prefetch = 0 : i64, scratch_operands = 0 : i64, tpu.core_type = #tpu.core_type<tc>, window_params = [{transform_indices = @transform_0, window_bounds = array<i64: 8, 32>}, {transform_indices = @transform_1, window_bounds = array<i64: 8, 32>}, {transform_indices = @transform_2, window_bounds = array<i64: 8, 32>}, {transform_indices = @transform_3, window_bounds = array<i64: 8, 32>}]} {
    %c0 = arith.constant 0 : index
    %c0_0 = arith.constant 0 : index
    %0 = vector.load %arg1[%c0, %c0_0] : memref<8x32xf32, #tpu.memory_space<vmem>>, vector<8x32xf32>
    %c0_1 = arith.constant 0 : index
    %c0_2 = arith.constant 0 : index
    %1 = vector.load %arg2[%c0_1, %c0_2] : memref<8x32xf32, #tpu.memory_space<vmem>>, vector<8x32xf32>
    %2 = arith.mulf %0, %0 : vector<8x32xf32>
    %cst = arith.constant dense<0.000000e+00> : vector<8xf32>
    %3 = vector.multi_reduction <add>, %2, %cst [1] : vector<8x32xf32> to vector<8xf32>
    %4 = vector.shape_cast %3 : vector<8xf32> to vector<8x1xf32>
    %cst_3 = arith.constant 1.000000e-24 : f32
    %5 = vector.broadcast %cst_3 : f32 to vector<8x1xf32>
    %6 = arith.maximumf %4, %5 : vector<8x1xf32>
    %7 = math.rsqrt %6 : vector<8x1xf32>
    %cst_4 = arith.constant 2.000000e+01 : f32
    %8 = vector.broadcast %cst_4 : f32 to vector<8x1xf32>
    %9 = arith.mulf %7, %8 : vector<8x1xf32>
    %10 = arith.mulf %1, %1 : vector<8x32xf32>
    %cst_5 = arith.constant dense<0.000000e+00> : vector<8xf32>
    %11 = vector.multi_reduction <add>, %10, %cst_5 [1] : vector<8x32xf32> to vector<8xf32>
    %12 = vector.shape_cast %11 : vector<8xf32> to vector<8x1xf32>
    %cst_6 = arith.constant 1.000000e-24 : f32
    %13 = vector.broadcast %cst_6 : f32 to vector<8x1xf32>
    %14 = arith.maximumf %12, %13 : vector<8x1xf32>
    %15 = math.rsqrt %14 : vector<8x1xf32>
    %16 = vector.broadcast %9 : vector<8x1xf32> to vector<8x32xf32>
    %17 = arith.mulf %0, %16 : vector<8x32xf32>
    %c0_7 = arith.constant 0 : index
    %c0_8 = arith.constant 0 : index
    %18 = vector.load %arg3[%c0_7, %c0_8] : memref<8x32xf32, #tpu.memory_space<vmem>>, vector<8x32xf32>
    tpu.vector_store %arg3[%c0_7, %c0_8], %17 {strides = array<i32>} : memref<8x32xf32, #tpu.memory_space<vmem>>, vector<8x32xf32>,
    %19 = vector.broadcast %15 : vector<8x1xf32> to vector<8x32xf32>
    %20 = arith.mulf %1, %19 : vector<8x32xf32>
    %c0_9 = arith.constant 0 : index
    %c0_10 = arith.constant 0 : index
    %21 = vector.load %arg4[%c0_9, %c0_10] : memref<8x32xf32, #tpu.memory_space<vmem>>, vector<8x32xf32>
    tpu.vector_store %arg4[%c0_9, %c0_10], %20 {strides = array<i32>} : memref<8x32xf32, #tpu.memory_space<vmem>>, vector<8x32xf32>,
    return
  }
  func.func @transform_0(%arg0: i32) -> (i32, i32) {
    %c0_i32 = arith.constant 0 : i32
    %c0_i32_0 = arith.constant 0 : i32
    return %arg0, %c0_i32 : i32, i32
  }
  func.func @transform_1(%arg0: i32) -> (i32, i32) {
    %c0_i32 = arith.constant 0 : i32
    %c0_i32_0 = arith.constant 0 : i32
    return %arg0, %c0_i32 : i32, i32
  }
  func.func @transform_2(%arg0: i32) -> (i32, i32) {
    %c0_i32 = arith.constant 0 : i32
    %c0_i32_0 = arith.constant 0 : i32
    return %arg0, %c0_i32 : i32, i32
  }
  func.func @transform_3(%arg0: i32) -> (i32, i32) {
    %c0_i32 = arith.constant 0 : i32
    %c0_i32_0 = arith.constant 0 : i32
    return %arg0, %c0_i32 : i32, i32
  }
}

</mosaic_0001>

<bundles_post_ra>
// kernel: tpu_custom_call.1
= control target key start
LH: loop header
LB: loop body
LE: loop exit
PB: predicated region body
PF: predicated region fallthrough
CT: control target
= control target key end

     0   :  { %9 = vsyncpa [#allocation3], 0  ;;  %s269_s0 = inlined_call_operand.hbm [shape: f32[8,32], index: 0, kind: input, shape index: {}]   ;;  %s270_s1 = inlined_call_operand.hbm [shape: f32[8,32], index: 1, kind: input, shape index: {}]   ;;  %s271_s2 = inlined_call_operand.hbm [shape: f32[8,32], index: 2, kind: output, shape index: {0}]   ;;  %s272_s3 = inlined_call_operand.hbm [shape: f32[8,32], index: 3, kind: output, shape index: {1}]  }
   0x1   :  { %10 = vsyncpa [#allocation6], 0 }
   0x2   :  { %11 = vsyncpa [#allocation4], 0 }
   0x3   :  { %12 = vsyncpa [#allocation9], 0  ;;  %s193_s12 = smov [#allocation2]   ;;  %s194_s14 = smov [#allocation5]  }
   0x4   :  { %s19_s13 = sshll.u32 %s193_s12, 4  ;;  %s29_s15 = sshll.u32 %s194_s14, 4  ;;  %s20_s13 = int_to_ptr.vmem [resolvable:$true] %s19_s13  ;;  %s30_s15 = int_to_ptr.vmem [resolvable:$true] %s29_s15 }
   0x5   :  { %s97_s18 = scalar_lea.hbm %s269_s0, 128 }
   0x6   :  { %p98_p0 = scmp.ne.s32.totalorder %s269_s0, %s97_s18  ;;  %p101_p1 = scmp.lt.u32.totalorder %s97_s18, %s269_s0 }
   0x8   :  { %p103_p2 = pnand %p101_p1, %p98_p0 }
   0xa   :  { %106 = shalt.err (!%p103_p2)
}
   0xb   :  { %s107_s23 = scalar_lea.vmem %s20_s13, 128  ;;  %p112_p4 = scmp.lt.s32.totalorder %s20_s13, %s20_s13 }
   0xc   :  { %p108_p3 = scmp.ne.s32.totalorder %s20_s13, %s107_s23  ;;  %p113_p5 = scmp.lt.s32.totalorder %s107_s23, %s107_s23 }
   0xe   :  { %p114_p6 = por %p113_p5, %p112_p4 }
  0x10   :  { %p115_p7 = pnand %p114_p6, %p108_p3 }
  0x12   :  { %118 = shalt.err (!%p115_p7)
}
  0x13   :  { %22 = dma.hbm_to_vmem [thread:$0]  %s269_s0, 128, %s20_s13, [#allocation3]  }
  0x14   :  { %s119_s28 = scalar_lea.hbm %s270_s1, 128 }
  0x15   :  { %p120_p8 = scmp.ne.s32.totalorder %s270_s1, %s119_s28  ;;  %p123_p9 = scmp.lt.u32.totalorder %s119_s28, %s270_s1 }
  0x17   :  { %p125_p10 = pnand %p123_p9, %p120_p8 }
  0x19   :  { %128 = shalt.err (!%p125_p10)
}
  0x1a   :  { %s129_s6 = scalar_lea.vmem %s30_s15, 128  ;;  %p134_p12 = scmp.lt.s32.totalorder %s30_s15, %s30_s15 }
  0x1b   :  { %p130_p11 = scmp.ne.s32.totalorder %s30_s15, %s129_s6  ;;  %p135_p13 = scmp.lt.s32.totalorder %s129_s6, %s129_s6 }
  0x1d   :  { %p136_p0 = por %p135_p13, %p134_p12 }
  0x1f   :  { %p137_p1 = pnand %p136_p0, %p130_p11 }
  0x21   :  { %140 = shalt.err (!%p137_p1)
}
  0x22   :  { %32 = dma.hbm_to_vmem [thread:$0]  %s270_s1, 128, %s30_s15, [#allocation6]  }
  0x23   :  { %185 = dma.done.wait [#allocation3], 128  }
  0x24   :  { %186 = vsyncadd [#allocation3], 4294967168 }
  0x25   :  { %187 = dma.done.wait [#allocation6], 128  }
  0x26   :  { %188 = vsyncadd [#allocation6], 4294967168  ;;  %v39_v0 = vld [vmem:[#allocation2] sm:$0xff]  ;;  %vm42_vm0 = vcmask 261120   ;;  %v40_v1 = vld [vmem:[#allocation5] sm:$0xff]  ;;  %s195_s1 = smov [#allocation7]  }
  0x27   :  { %v41_v2 = vmul.f32 %v39_v0, %v39_v0  ;;  %v49_v3 = vmul.f32 %v40_v1, %v40_v1  ;;  %s65_s8 = sshll.u32 %s195_s1, 4  ;;  %s196_s9 = smov [#allocation8]   ;;  %s66_s8 = int_to_ptr.vmem [resolvable:$true] %s65_s8 }
  0x28   :  { %s75_s10 = sshll.u32 %s196_s9, 4  ;;  %s141_s11 = scalar_lea.vmem %s66_s8, 128  ;;  %s76_s10 = int_to_ptr.vmem [resolvable:$true] %s75_s10 }
  0x29   :  { %v43_v4 = vsel %vm42_vm0, %v41_v2, 0.0  ;;  %v50_v5 = vsel %vm42_vm0, %v49_v3, 0.0  ;;  %p142_p2 = scmp.ne.s32.totalorder %s66_s8, %s141_s11  ;;  %p146_p3 = scmp.lt.s32.totalorder %s66_s8, %s66_s8 }
  0x2a   :  { %44 = vadd.xlane.f32.xlu0 %v43_v4  ;;  %p147_p4 = scmp.lt.s32.totalorder %s141_s11, %s141_s11 }
  0x2c   :  { %p148_p5 = por %p147_p4, %p146_p3 }
  0x2e   :  { %51 = vadd.xlane.f32.xlu0 %v50_v5  ;;  %p149_p6 = pnand %p148_p5, %p142_p2 }
  0xb7   :  { %v45_v6 = vpop.xlane.xlu0 %44 }
  0xb8   :  { %v46_v7 = vmax.f32 %v45_v6, 1e-24 }
  0xba   :  { %93 = vrsqrt.f32 %v46_v7 }
  0xbb   :  { %v52_v8 = vpop.xlane.xlu0 %51 }
  0xbc   :  { %v53_v9 = vmax.f32 %v52_v8, 1e-24 }
  0xbe   :  { %95 = vrsqrt.f32 %v53_v9 }
  0xc4   :  { %v94_v10 = vpop.eup %93 }
  0xc5   :  { %v48_v11 = vmul.f32 20.0, %v94_v10 }
  0xc7   :  { %v55_v12 = vmul.f32 %v48_v11, %v39_v0 }
  0xc8   :  { %v96_v13 = vpop.eup %95 }
  0xc9   :  { %56 = vst.msk [vmem:[#allocation7] sm:$0xff] %vm42_vm0, %v55_v12  ;;  %v57_v14 = vmul.f32 %v96_v13, %v40_v1 }
  0xca   :  { %152 = shalt.err (!%p149_p6)
}
  0xcb   :  { %s153_s14 = scalar_lea.hbm %s271_s2, 128 }
  0xcc   :  { %p154_p7 = scmp.ne.s32.totalorder %s271_s2, %s153_s14  ;;  %p157_p8 = scmp.lt.u32.totalorder %s153_s14, %s271_s2 }
  0xce   :  { %p159_p9 = pnand %p157_p8, %p154_p7 }
  0xd0   :  { %162 = shalt.err (!%p159_p9)
}
  0xd1   :  { %68 = dma.vmem_to_hbm [thread:$0]  %s66_s8, 128, %s271_s2, [#allocation4]   ;;  %58 = vst.msk [vmem:[#allocation8] sm:$0xff] %vm42_vm0, %v57_v14 }
  0xd2   :  { %s163_s21 = scalar_lea.vmem %s76_s10, 128  ;;  %p168_p11 = scmp.lt.s32.totalorder %s76_s10, %s76_s10 }
  0xd3   :  { %p164_p10 = scmp.ne.s32.totalorder %s76_s10, %s163_s21  ;;  %p169_p12 = scmp.lt.s32.totalorder %s163_s21, %s163_s21 }
  0xd5   :  { %p170_p13 = por %p169_p12, %p168_p11 }
  0xd7   :  { %p171_p0 = pnand %p170_p13, %p164_p10 }
  0xd9   :  { %174 = shalt.err (!%p171_p0)
}
  0xda   :  { %s175_s24 = scalar_lea.hbm %s272_s3, 128 }
  0xdb   :  { %p176_p1 = scmp.ne.s32.totalorder %s272_s3, %s175_s24  ;;  %p179_p2 = scmp.lt.u32.totalorder %s175_s24, %s272_s3 }
  0xdd   :  { %p181_p3 = pnand %p179_p2, %p176_p1 }
  0xdf   :  { %184 = shalt.err (!%p181_p3)
}
  0xe0   :  { %78 = dma.vmem_to_hbm [thread:$0]  %s76_s10, 128, %s272_s3, [#allocation9]  }
  0xe1   :  { %189 = dma.done.wait [#allocation4], 128  }
  0xe2   :  { %190 = vsyncadd [#allocation4], 4294967168 }
  0xe3   :  { %191 = dma.done.wait [#allocation9], 128  }
  0xe4   :  { %192 = vsyncadd [#allocation9], 4294967168 }
  0xe5   :  { %85 = vsyncpa [#allocation3], 1 }
  0xe6   :  { %86 = vsyncpa [#allocation6], 1 }
  0xe7   :  { %87 = vsyncpa [#allocation4], 1 }
  0xe8   :  { %88 = vsyncpa [#allocation9], 1 }

</bundles_post_ra>
